<compile_context>
chip_gen: v7x
topology: tpu7x:2x2x1
jax: 0.10.0
libtpu: 0.0.40
codegen_flags: <defaults>
</compile_context>

<pallas_src>
import jax
import jax.numpy as jnp
from jax.experimental import pallas as pl
from jax.experimental.pallas import tpu as pltpu


def _round_up(x, m):
    return (x + m - 1) // m * m


def _pick_tile_h(H, W, max_rows=128):
    """Largest divisor of H with TILE_H * W <= max_rows (bounds the f32 accumulator)."""
    best = 1
    for t in range(1, H + 1):
        if H % t == 0 and t * W <= max_rows:
            best = t
    return best


# ---------------------------------------------------------------------------
# Fused 3x3 conv (+ bias) (+ PReLU, single shared parameter) Pallas kernel.
# ---------------------------------------------------------------------------
def conv3x3_bias_prelu(x_nhwc_bf16, w3_bf16, bias_f32, prelu_a_f32):
    """x: (N, H, W, Cin) bf16.  w3: (3, 3*Cin, Cout_pad) bf16 with
    w3[ky, kx*Cin+ci, co] == w_torch[co, ci, ky, kx].  bias: (1, Cout_pad) f32.
    prelu_a: (1, 1) f32 (shared parameter).  Returns the stride-1 'same' conv
    output (N, H, W, Cout_pad) bf16 after y = PReLU(conv(x) + bias)."""
    N, H, W, Cin = x_nhwc_bf16.shape
    Cout_pad = w3_bf16.shape[-1]
    assert Cout_pad % 128 == 0, "Cout must be padded to a multiple of 128"
    tile_co = 128                       # lane-dense output tiles, 16-vreg accumulator
    n_co = Cout_pad // tile_co

    TILE_H = _pick_tile_h(H, W)         # accumulator rows = TILE_H*W <= 128
    n_h = H // TILE_H

    xp = jnp.pad(x_nhwc_bf16, ((0, 0), (1, 1), (1, 1), (0, 0)))   # padding=1
    Hp, Wp = H + 2, W + 2

    def kernel(x_ref, w_ref, b_ref, a_ref, o_ref):
        h = pl.program_id(2)
        row0 = pl.multiple_of(h * TILE_H, TILE_H)
        # (TILE_H+2, Wp, Cin) halo rows of the resident padded image for this tile.
        xs = x_ref[0, pl.ds(row0, TILE_H + 2), :, :]
        # Three kx-shifted slabs, built once, lane-concatenated -> K = 3*Cin.
        slab = jnp.concatenate(
            [xs[:, 0:W, :], xs[:, 1:W + 1, :], xs[:, 2:W + 2, :]], axis=-1
        )                                               # (TILE_H+2, W, 3*Cin) bf16
        acc = jnp.zeros((TILE_H * W, tile_co), jnp.float32)
        for ky in range(3):                             # cheap major-dim sub-slices
            lhs = slab[ky:ky + TILE_H].reshape(TILE_H * W, 3 * Cin)
            acc = acc + jnp.dot(lhs, w_ref[ky],         # (3*Cin, tile_co) bf16
                                preferred_element_type=jnp.float32)
        y = acc + b_ref[...]                            # bias, f32 epilogue
        a = a_ref[0, 0]                                 # shared PReLU slope (SMEM scalar)
        y = jnp.where(y >= 0.0, y, y * a)               # PReLU
        o_ref[...] = y.astype(o_ref.dtype).reshape(1, TILE_H, W, tile_co)

    # Scoped VMEM sized from the actual double-buffered per-step blocks.
    x_blk = Hp * Wp * Cin * 2
    w_blk = 3 * (3 * Cin) * tile_co * 2
    b_blk = 8 * 128 * 4
    o_blk = TILE_H * W * tile_co * 2
    vmem_bytes = 2 * (x_blk + w_blk + b_blk + o_blk) + (2 << 20)
    vmem_bytes = int(min(max(vmem_bytes, 16 << 20), 48 << 20))   # v7x: 64 MiB/TC cap

    return pl.pallas_call(
        kernel,
        out_shape=jax.ShapeDtypeStruct((N, H, W, Cout_pad), jnp.bfloat16),
        grid=(N, n_co, n_h),
        in_specs=[
            # Full padded image per batch; the index map is constant over (c, h) so
            # the block stays resident in VMEM (one DMA per image).
            # TODO(synk): for very large images (input block > a few MiB) switch to
            #             an overlapping halo block on the H axis (pl.Element).
            pl.BlockSpec((1, Hp, Wp, Cin), lambda n, c, h: (n, 0, 0, 0)),
            pl.BlockSpec((3, 3 * Cin, tile_co), lambda n, c, h: (0, 0, c)),
            pl.BlockSpec((1, tile_co), lambda n, c, h: (0, c)),
            pl.BlockSpec(memory_space=pltpu.MemorySpace.SMEM),   # PReLU slope scalar
        ],
        out_specs=pl.BlockSpec((1, TILE_H, W, tile_co),
                               lambda n, c, h: (n, h, 0, c)),
        compiler_params=pltpu.CompilerParams(
            dimension_semantics=("parallel", "parallel", "parallel"),
            vmem_limit_bytes=vmem_bytes,
        ),
    )(xp, w3_bf16, bias_f32, prelu_a_f32)


# ---------------------------------------------------------------------------
# PixelShuffle (layout-only) + full UpsampleBLock forward.
# ---------------------------------------------------------------------------
def pixel_shuffle_nhwc(y_nhwc, r, layout="NCHW"):
    """(N, H, W, Cin*r^2) NHWC -> PixelShuffle(r); output NCHW or NHWC."""
    N, H, W, Cr2 = y_nhwc.shape
    Cin = Cr2 // (r * r)
    y = y_nhwc.reshape(N, H, W, Cin, r, r)            # channel -> (c, i, j), PyTorch order
    if layout == "NCHW":
        y = jnp.transpose(y, (0, 3, 1, 4, 2, 5))      # (N, Cin, H, r, W, r)
        return y.reshape(N, Cin, H * r, W * r)
    y = jnp.transpose(y, (0, 1, 4, 2, 5, 3))          # (N, H, r, W, r, Cin)
    return y.reshape(N, H * r, W * r, Cin)


def upsample_block_forward(x_nchw, w9, bias, prelu_a, up_scale, layout="NCHW"):
    """Matches UpsampleBLock.forward: conv3x3(pad=1) -> pixel_shuffle -> PReLU.

    x_nchw: (N, Cin, H, W) f32.  w9: (9, Cin, Cin*r^2) with
    w9[ky*3+kx, ci, co] == w_torch[co, ci, ky, kx].  bias: (Cin*r^2,).
    prelu_a: scalar (nn.PReLU() default: one shared parameter).
    layout="NHWC" keeps the upsampled activation NHWC (skips the NCHW transpose,
    i.e. a full extra HBM pass, when blocks are chained); "NCHW" matches PyTorch.
    Accuracy contract: inputs/weights are rounded to bf16 (MXU path), accumulation
    and the bias/PReLU epilogue are f32, output rounded to bf16 once."""
    r = up_scale
    N, Cin, H, W = x_nchw.shape
    Cout = Cin * r * r
    assert w9.shape == (9, Cin, Cout)

    x = jnp.transpose(x_nchw, (0, 2, 3, 1)).astype(jnp.bfloat16)        # NHWC, bf16
    # (9, Cin, Cout) -> (3, 3*Cin, Cout): w3[ky, kx*Cin+ci, co] (matches kx lane-concat)
    w3 = w9.reshape(3, 3, Cin, Cout).reshape(3, 3 * Cin, Cout)
    # Pad Cout to a multiple of 128: lane-dense stores, bounded accumulator; padded
    # channels get zero weight/bias and are sliced off below.
    Cout_pad = _round_up(Cout, 128)
    if Cout_pad != Cout:
        w3 = jnp.pad(w3, ((0, 0), (0, 0), (0, Cout_pad - Cout)))
        bias = jnp.pad(bias, (0, Cout_pad - Cout))
    w3 = w3.astype(jnp.bfloat16)
    b = bias.reshape(1, Cout_pad).astype(jnp.float32)
    a = jnp.asarray(prelu_a, jnp.float32).reshape(1, 1)

    # PReLU with a single shared parameter commutes with the PixelShuffle
    # permutation, so it is fused into the conv kernel epilogue.
    # TODO(synk): per-channel PReLU (num_parameters=Cin) would have to be applied
    #             after the shuffle instead; not needed for the default module.
    y = conv3x3_bias_prelu(x, w3, b, a)                 # (N, H, W, Cout_pad) bf16
    if Cout_pad != Cout:
        y = y[..., :Cout]
    # PixelShuffle (+ optional NCHW) is pure layout plumbing on bf16 data.
    return pixel_shuffle_nhwc(y, r, layout=layout).astype(jnp.float32)


# ---------------------------------------------------------------------------
# Plain-XLA reference (same bf16-rounded inputs, f32 math) for validation.
# Follows the PyTorch op order exactly (PReLU applied AFTER the pixel shuffle).
# ---------------------------------------------------------------------------
def _reference(x_nchw, w9, bias, prelu_a, up_scale):
    x = jnp.transpose(x_nchw, (0, 2, 3, 1)).astype(jnp.bfloat16).astype(jnp.float32)
    w = w9.astype(jnp.bfloat16).astype(jnp.float32)
    N, H, W, Cin = x.shape
    Cout = w.shape[-1]
    xp = jnp.pad(x, ((0, 0), (1, 1), (1, 1), (0, 0)))
    acc = jnp.zeros((N, H, W, Cout), jnp.float32)
    for ky in range(3):
        for kx in range(3):
            acc = acc + jnp.einsum(
                "nhwc,cd->nhwd",
                xp[:, ky:ky + H, kx:kx + W, :], w[ky * 3 + kx],
                precision=jax.lax.Precision.HIGHEST,
            )
    y = acc + bias.reshape(1, 1, 1, Cout)
    y = pixel_shuffle_nhwc(y, up_scale, layout="NCHW")
    return jnp.where(y >= 0.0, y, prelu_a * y)


if __name__ == "__main__":
    key = jax.random.PRNGKey(0)
    k1, k2, k3 = jax.random.split(key, 3)

    # Small, module-consistent shapes: batch=2, in_channels=32, 16x16, up_scale=2
    # -> conv out channels = 32 * 2^2 = 128 (lane-dense, no Cout padding needed).
    N, Cin, H, W = 2, 32, 16, 16
    up_scale = 2
    Cout = Cin * up_scale ** 2

    x = jax.random.normal(k1, (N, Cin, H, W), jnp.float32)
    w9 = 0.05 * jax.random.normal(k2, (9, Cin, Cout), jnp.float32)
    bias = 0.05 * jax.random.normal(k3, (Cout,), jnp.float32)
    prelu_a = 0.25                        # nn.PReLU() default init

    out = upsample_block_forward(x, w9, bias, prelu_a, up_scale)
    out = jax.block_until_ready(out)
    assert out.shape == (N, Cin, H * up_scale, W * up_scale)
    assert bool(jnp.all(jnp.isfinite(out)))

    ref = _reference(x, w9, bias, prelu_a, up_scale)
    max_err = float(jnp.max(jnp.abs(out - ref)))
    assert bool(jnp.allclose(out, ref, rtol=2e-2, atol=2e-2)), max_err

    print("KERNEL_OK")
</pallas_src>

<mosaic_0001>
module attributes {stable_mosaic.version = 11 : i64} {
  func.func @kernel(%arg0: i32, %arg1: i32, %arg2: i32, %arg3: memref<1x18x18x32xbf16, #tpu.memory_space<vmem>>, %arg4: memref<3x96x128xbf16, #tpu.memory_space<vmem>>, %arg5: memref<1x128xf32, #tpu.memory_space<vmem>>, %arg6: memref<1x1xf32, #tpu.memory_space<smem>>, %arg7: memref<1x8x16x128xbf16, #tpu.memory_space<vmem>>) attributes {dimension_semantics = [#tpu.dimension_semantics<parallel>, #tpu.dimension_semantics<parallel>, #tpu.dimension_semantics<parallel>], iteration_bounds = array<i64: 2, 1, 2>, scalar_prefetch = 0 : i64, scratch_operands = 0 : i64, tpu.core_type = #tpu.core_type<tc>, window_params = [{transform_indices = @transform_0, window_bounds = array<i64: 1, 18, 18, 32>}, {transform_indices = @transform_1, window_bounds = array<i64: 3, 96, 128>}, {transform_indices = @transform_2, window_bounds = array<i64: 1, 128>}, {transform_indices = @transform_3, window_bounds = array<i64: 1, 1>}, {transform_indices = @transform_4, window_bounds = array<i64: 1, 8, 16, 128>}]} {
    %c8_i32 = arith.constant 8 : i32
    %0 = arith.muli %arg2, %c8_i32 : i32
    %1 = tpu.assume_multiple %0, 8 : i32
    %c0 = arith.constant 0 : index
    %2 = arith.index_cast %1 : i32 to index
    %c0_0 = arith.constant 0 : index
    %c0_1 = arith.constant 0 : index
    %3 = vector.load %arg3[%c0, %2, %c0_0, %c0_1] : memref<1x18x18x32xbf16, #tpu.memory_space<vmem>>, vector<1x10x18x32xbf16>
    %4 = vector.shape_cast %3 : vector<1x10x18x32xbf16> to vector<10x18x32xbf16>
    %5 = vector.extract_strided_slice %4 {offsets = [0, 0, 0], sizes = [10, 16, 32], strides = [1, 1, 1]} : vector<10x18x32xbf16> to vector<10x16x32xbf16>
    %6 = vector.extract_strided_slice %4 {offsets = [0, 1, 0], sizes = [10, 16, 32], strides = [1, 1, 1]} : vector<10x18x32xbf16> to vector<10x16x32xbf16>
    %7 = vector.extract_strided_slice %4 {offsets = [0, 2, 0], sizes = [10, 16, 32], strides = [1, 1, 1]} : vector<10x18x32xbf16> to vector<10x16x32xbf16>
    %8 = tpu.concatenate %5, %6, %7 in 2 : vector<10x16x32xbf16>, vector<10x16x32xbf16>, vector<10x16x32xbf16> -> vector<10x16x96xbf16>
    %cst = arith.constant 0.000000e+00 : f32
    %9 = vector.broadcast %cst : f32 to vector<128x128xf32>
    %10 = vector.extract_strided_slice %8 {offsets = [0, 0, 0], sizes = [8, 16, 96], strides = [1, 1, 1]} : vector<10x16x96xbf16> to vector<8x16x96xbf16>
    %11 = vector.shape_cast %10 : vector<8x16x96xbf16> to vector<128x96xbf16>
    %c0_2 = arith.constant 0 : index
    %c0_3 = arith.constant 0 : index
    %c0_4 = arith.constant 0 : index
    %12 = vector.load %arg4[%c0_2, %c0_3, %c0_4] : memref<3x96x128xbf16, #tpu.memory_space<vmem>>, vector<1x96x128xbf16>
    %13 = vector.shape_cast %12 : vector<1x96x128xbf16> to vector<96x128xbf16>
    %cst_5 = arith.constant dense<0.000000e+00> : vector<128x128xf32>
    %14 = tpu.matmul %11, %13, %cst_5 {dimension_numbers = #tpu.dot_dimension_numbers<[1], [0], [0], [1], [0, 0, 1, 1], [], []>} : vector<128x96xbf16>, vector<96x128xbf16>, vector<128x128xf32> -> vector<128x128xf32>
    %15 = arith.addf %9, %14 : vector<128x128xf32>
    %16 = vector.extract_strided_slice %8 {offsets = [1, 0, 0], sizes = [8, 16, 96], strides = [1, 1, 1]} : vector<10x16x96xbf16> to vector<8x16x96xbf16>
    %17 = vector.shape_cast %16 : vector<8x16x96xbf16> to vector<128x96xbf16>
    %c1 = arith.constant 1 : index
    %c0_6 = arith.constant 0 : index
    %c0_7 = arith.constant 0 : index
    %18 = vector.load %arg4[%c1, %c0_6, %c0_7] : memref<3x96x128xbf16, #tpu.memory_space<vmem>>, vector<1x96x128xbf16>
    %19 = vector.shape_cast %18 : vector<1x96x128xbf16> to vector<96x128xbf16>
    %cst_8 = arith.constant dense<0.000000e+00> : vector<128x128xf32>
    %20 = tpu.matmul %17, %19, %cst_8 {dimension_numbers = #tpu.dot_dimension_numbers<[1], [0], [0], [1], [0, 0, 1, 1], [], []>} : vector<128x96xbf16>, vector<96x128xbf16>, vector<128x128xf32> -> vector<128x128xf32>
    %21 = arith.addf %15, %20 : vector<128x128xf32>
    %22 = vector.extract_strided_slice %8 {offsets = [2, 0, 0], sizes = [8, 16, 96], strides = [1, 1, 1]} : vector<10x16x96xbf16> to vector<8x16x96xbf16>
    %23 = vector.shape_cast %22 : vector<8x16x96xbf16> to vector<128x96xbf16>
    %c2 = arith.constant 2 : index
    %c0_9 = arith.constant 0 : index
    %c0_10 = arith.constant 0 : index
    %24 = vector.load %arg4[%c2, %c0_9, %c0_10] : memref<3x96x128xbf16, #tpu.memory_space<vmem>>, vector<1x96x128xbf16>
    %25 = vector.shape_cast %24 : vector<1x96x128xbf16> to vector<96x128xbf16>
    %cst_11 = arith.constant dense<0.000000e+00> : vector<128x128xf32>
    %26 = tpu.matmul %23, %25, %cst_11 {dimension_numbers = #tpu.dot_dimension_numbers<[1], [0], [0], [1], [0, 0, 1, 1], [], []>} : vector<128x96xbf16>, vector<96x128xbf16>, vector<128x128xf32> -> vector<128x128xf32>
    %27 = arith.addf %21, %26 : vector<128x128xf32>
    %c0_12 = arith.constant 0 : index
    %c0_13 = arith.constant 0 : index
    %28 = vector.load %arg5[%c0_12, %c0_13] : memref<1x128xf32, #tpu.memory_space<vmem>>, vector<1x128xf32>
    %29 = vector.broadcast %28 : vector<1x128xf32> to vector<128x128xf32>
    %30 = arith.addf %27, %29 : vector<128x128xf32>
    %c0_14 = arith.constant 0 : index
    %c0_15 = arith.constant 0 : index
    %31 = memref.load %arg6[%c0_14, %c0_15] : memref<1x1xf32, #tpu.memory_space<smem>>
    %cst_16 = arith.constant 0.000000e+00 : f32
    %32 = vector.broadcast %cst_16 : f32 to vector<128x128xf32>
    %33 = arith.cmpf oge, %30, %32 : vector<128x128xf32>
    %34 = vector.broadcast %31 : f32 to vector<128x128xf32>
    %35 = arith.mulf %30, %34 : vector<128x128xf32>
    %36 = arith.select %33, %30, %35 : vector<128x128xi1>, vector<128x128xf32>
    %37 = arith.truncf %36 : vector<128x128xf32> to vector<128x128xbf16>
    %38 = vector.shape_cast %37 : vector<128x128xbf16> to vector<1x8x16x128xbf16>
    %c0_17 = arith.constant 0 : index
    %c0_18 = arith.constant 0 : index
    %c0_19 = arith.constant 0 : index
    %c0_20 = arith.constant 0 : index
    %39 = vector.load %arg7[%c0_17, %c0_18, %c0_19, %c0_20] : memref<1x8x16x128xbf16, #tpu.memory_space<vmem>>, vector<1x8x16x128xbf16>
    tpu.vector_store %arg7[%c0_17, %c0_18, %c0_19, %c0_20], %38 {strides = array<i32>} : memref<1x8x16x128xbf16, #tpu.memory_space<vmem>>, vector<1x8x16x128xbf16>,
    return
  }
  func.func @transform_0(%arg0: i32, %arg1: i32, %arg2: i32) -> (i32, i32, i32, i32) {
    %c0_i32 = arith.constant 0 : i32
    %c0_i32_0 = arith.constant 0 : i32
    %c0_i32_1 = arith.constant 0 : i32
    %c0_i32_2 = arith.constant 0 : i32
    return %arg0, %c0_i32, %c0_i32_0, %c0_i32_1 : i32, i32, i32, i32
  }
  func.func @transform_1(%arg0: i32, %arg1: i32, %arg2: i32) -> (i32, i32, i32) {
    %c0_i32 = arith.constant 0 : i32
    %c0_i32_0 = arith.constant 0 : i32
    %c0_i32_1 = arith.constant 0 : i32
    return %c0_i32, %c0_i32_0, %arg1 : i32, i32, i32
  }
  func.func @transform_2(%arg0: i32, %arg1: i32, %arg2: i32) -> (i32, i32) {
    %c0_i32 = arith.constant 0 : i32
    %c0_i32_0 = arith.constant 0 : i32
    return %c0_i32, %arg1 : i32, i32
  }
  func.func @transform_3(%arg0: i32, %arg1: i32, %arg2: i32) -> (i32, i32) {
    %c0_i32 = arith.constant 0 : i32
    %c0_i32_0 = arith.constant 0 : i32
    %c0_i32_1 = arith.constant 0 : i32
    return %c0_i32, %c0_i32_0 : i32, i32
  }
  func.func @transform_4(%arg0: i32, %arg1: i32, %arg2: i32) -> (i32, i32, i32, i32) {
    %c0_i32 = arith.constant 0 : i32
    %c0_i32_0 = arith.constant 0 : i32
    return %arg0, %arg2, %c0_i32, %arg1 : i32, i32, i32, i32
  }
}

</mosaic_0001>

<bundles_post_ra>
// kernel: tpu_custom_call.1
= control target key start
LH: loop header
LB: loop body
LE: loop exit
PB: predicated region body
PF: predicated region fallthrough
CT: control target
= control target key end

     0   :  { %s2403_s0 = inlined_call_operand.vmem [shape: bf16[2,18,18,32], index: 0, kind: input, shape index: {}]   ;;  %s2404_s1 = inlined_call_operand.vmem [shape: bf16[3,96,128], index: 1, kind: input, shape index: {}]   ;;  %s2405_s2 = inlined_call_operand.vmem [shape: f32[1,128], index: 2, kind: input, shape index: {}]   ;;  %s2406_s3 = inlined_call_operand.<no memory space> [shape: f32[1,1], index: 3, kind: input, shape index: {}]   ;;  %s2407_s4 = inlined_call_operand.hbm [shape: bf16[2,16,16,128], index: 4, kind: output, shape index: {}]  }
   0x1   :  { %9 = sst [smem:[#allocation2]] %s2406_s3 }
   0x2   :  { %10 = vsyncpa [#allocation4], 0 }
   0x3   :  { %12 = vsyncpa [#allocation4 + $0x1], 0  ;;  %s1953_s17 = smov 0   ;;  %s1955_s18 = smov 0  }
   0x4   :  { %s1957_s19 = smov 0   ;;  %s1959_s20 = smov 0  }
   0x5   :  { %s1961_s21 = smov 0   ;;  %s1963_s22 = smov 0  }
   0x6   :  { %s1965_s23 = smov 0   ;;  %s1967_s24 = smov 0  }
   0x7 LB: > { %s1355_s3 = sadd.s32 4294967295, %s1919_s24   ;;  %s1356_s25 = sadd.s32 4294967294, %s1919_s24   ;;  %s1919_s24 = sphi %s1967_s24, %s18_s24   ;;  %s1915_s23 = sphi %s1965_s23, %s2416_s23   ;;  %s1911_s22 = sphi %s1963_s22, %s2415_s22   ;;  %s1907_s21 = sphi %s1961_s21, %s2414_s21   ;;  %s1903_s20 = sphi %s1959_s20, %s2413_s20   ;;  %s1899_s19 = sphi %s1957_s19, %s2412_s19   ;;  %s1895_s18 = sphi %s1955_s18, %s2411_s18   ;;  %s1891_s17 = sphi %s1953_s17, %s2410_s17  }
   0x8   : > { %s30_s26 = sadd.s32 1, %s1911_s22  ;;  %s37_s27 = sadd.s32 1, %s1915_s23 }
   0x9   : > { %p31_p0 = scmp.ge.s32.totalorder %s30_s26, 2  ;;  %p157_p1 = scmp.ne.s32.totalorder %s1899_s19, %s1895_s18 }
   0xa   : > { %p158_p2 = scmp.eq.s32.totalorder %s1355_s3, 3  ;;  %p163_p5 = scmp.ne.s32.totalorder %s1895_s18, %s1891_s17 }
   0xb   : > { %s2418_s26 = smov (%p31_p0, %s30_s26), 0  ;;  %s2420_s27 = smov (!%p31_p0, %s37_s27), %s1915_s23 }
   0xc   : > { %s141_s28 = ssub.s32 %s1911_s22, %s2418_s26  ;;  %p2004_p3 = por %p158_p2, %p157_p1 }
   0xd   : > { %p39_p4 = scmp.ge.s32.totalorder %s2420_s27, 2  ;;  %p164_p6 = scmp.eq.s32.totalorder %s1356_s25, 3 }
   0xe   : > { %p1361_p7 = scmp.ge.s32.totalorder %s1919_s24, 1  ;;  %p206_p9 = scmp.lt.s32.totalorder %s1919_s24, 5 }
   0xf   : > { %s2422_s27 = smov (%p39_p4, %s2420_s27), 0  ;;  %p2013_p8 = por %p164_p6, %p163_p5 }
  0x10   : > { %s140_s5 = ssub.s32 %s1915_s23, %s2422_s27  ;;  %s147_s6 = sadd.s32 1, %s1899_s19 }
  0x11   : > { %s142_s7 = sor.u32 %s141_s28, %s140_s5  ;;  %p207_p10 = pnand %p1361_p7, %p206_p9 }
  0x12   : > { %p145_p11 = scmp.eq.s32.totalorder %s142_s7, 0  ;;  %p239_p12 = scmp.lt.s32.totalorder (!%p207_p10), %s1907_s21, 1  ;;  %v1807_v0 = vld [vmem:[%s2404_s1 + $0x30] sm:$0xff] (!%p207_p10)   ;;  %v1808_v1 = vld [vmem:[%s2404_s1] sm:$0xff] (!%p207_p10)   ;;  %v1809_v2 = vld [vmem:[%s2404_s1 + $0x38] sm:$0xff] (!%p207_p10)   ;;  %vm508_vm0 = vcmask (!%p207_p10), 1046528  }
  0x13   : > { %210 = sbr.rel (%p207_p10) target bundleno = 449 (0x1c1), region = 36  ;;  %1584 = vmatprep.subr.bf16.mxu1 (!%p207_p10), %v1807_v0  ;;  %1612 = vmatprep.subr.bf16.mxu0 (!%p207_p10), %v1808_v1  ;;  %v1810_v3 = vld [vmem:[%s2404_s1 + $0x8] sm:$0xff] (!%p207_p10)   ;;  %v1811_v4 = vld [vmem:[%s2404_s1 + $0x40] sm:$0xff] (!%p207_p10)   ;;  %vm367_vm1 = vsmask.f32 (!%p207_p10), 7424  ;;  %v1812_v5 = vld [vmem:[%s2404_s1 + $0x10] sm:$0xff] (!%p207_p10)  }
  0x14   : > { %s2022_s8 = scalar_select %p145_p11, %s1899_s19, %s147_s6  }
  0x15   : > { %s1477_s14 = smul.u32 (!%p207_p10), 96, %s1903_s20  ;;  %1585 = vmatpush3.bf16.msra.mxu1 (!%p207_p10), %v1807_v0  ;;  %1613 = vmatpush3.bf16.msra.mxu0 (!%p207_p10), %v1808_v1  ;;  %v1813_v6 = vld [vmem:[%s2404_s1 + $0x48] sm:$0xff] (!%p207_p10)   ;;  %vm559_vm2 = vcmask (!%p207_p10), 261120   ;;  %vm580_vm3 = vcmask (!%p207_p10), 523264   ;;  %vm662_vm4 = vcmask (!%p207_p10), 785408   ;;  %s1098_s15 = sld [smem:[#allocation2]] (!%p207_p10) }
  0x16   : > { %1586 = vmatprep.subr.bf16.mxu1 (!%p207_p10), %v1809_v2  ;;  %1614 = vmatprep.subr.bf16.mxu0 (!%p207_p10), %v1810_v3  ;;  %s1494_s5 = sshll.u32 (!%p207_p10), %s1903_s20, 4  ;;  %s1473_s6 = sshll.u32 (!%p207_p10), %s1907_s21, 5 }
  0x17   : > { %s1243_s7 = sadd.s32 (!%p207_p10), %s1494_s5, %s1473_s6 }
  0x18   : > { %s1474_s20 = sshll.u32 (!%p207_p10), %s1243_s7, 6 }
  0x19   : > { %1587 = vmatpush3.bf16.msra.mxu1 (!%p207_p10), %v1809_v2  ;;  %1615 = vmatpush3.bf16.msra.mxu0 (!%p207_p10), %v1810_v3  ;;  %s2340_s12 = scalar_lea.hbm (!%p207_p10), %s2407_s4, %s1474_s20 }
  0x1a   : > { %s240_s11 = scalar_select %p239_p12, %s1907_s21, 1  ;;  %1588 = vmatprep.subr.bf16.mxu1 %v1811_v4  ;;  %1616 = vmatprep.subr.bf16.mxu0 %v1812_v5 }
  0x1c   : > { %s1712_s3 = smul.u32 216, %s240_s11 }
  0x1d   : > { %1589 = vmatpush3.bf16.msra.mxu1 %v1811_v4  ;;  %1617 = vmatpush3.bf16.msra.mxu0 %v1812_v5 }
  0x1e   : > { %s243_s10 = scalar_lea.vmem %s2403_s0, %s1712_s3  ;;  %1590 = vmatprep.subr.bf16.mxu1 %v1813_v6  ;;  %s1922_s3 = smov 32  }
  0x1f   : > { %s2048_s13 = scalar_lea.vmem %s243_s10, %s1477_s14  ;;  %s1921_s14 = smov 64  }
  0x20   : > { %v2054_v7 = vld [vmem:[%s2048_s13] sm:$0xff]   ;;  %v1788_v8 = vld [vmem:[%s2048_s13 + $0x8] ss:$0 sps:$4 sm:$0x11]   ;;  %v2058_v9 = vld [vmem:[%s2048_s13 + $0x18] sm:$0xff]  }
  0x21   : > { %v509_v10 = vrot.slane %v2054_v7, 1  ;;  %v510_v11 = vrot.slane %v1788_v8, 1  ;;  %v369_v12 = vshrl.u32 %v2054_v7, 16  ;;  %v371_v13 = vshll.u32 %v2054_v7, 16  ;;  %v2068_v20 = vld [vmem:[%s2048_s13 + $0xc] sm:$0xff]   ;;  %1591 = vmatpush3.bf16.msra.mxu1 %v1813_v6  ;;  %v2081_v38 = vld [vmem:[%s2048_s13 + $0x24] sm:$0xff]  }
  0x22   : > { %v376_v14 = vshll.u32 %v1788_v8, 16  ;;  %v1790_v15 = vld [vmem:[%s2048_s13 + $0x20] ss:$0 sps:$4 sm:$0x11]   ;;  %v393_v16 = vshrl.u32 %v2058_v9, 16  ;;  %v395_v17 = vshll.u32 %v2058_v9, 16 }
  0x23   : > { %v511_v18 = vsel %vm508_vm0, %v509_v10, %v510_v11  ;;  %v373_v19 = vrot.slane %v371_v13, 1  ;;  %v400_v23 = vshll.u32 %v1790_v15, 16  ;;  %v1792_v24 = vld [vmem:[%s2048_s13 + $0x14] ss:$0 sps:$4 sm:$0x11]   ;;  %v381_v26 = vshrl.u32 %v2068_v20, 16 }
  0x24   : > { %539 = vrot.lane.b32.xlu1 %v511_v18, %s1921_s14  ;;  %v378_v21 = vrot.slane %v376_v14, 1  ;;  %v397_v22 = vrot.slane %v395_v17, 1  ;;  %v383_v27 = vshll.u32 %v2068_v20, 16  ;;  %v515_v28 = vrot.slane %v2058_v9, 1  ;;  %v2076_v29 = vld [vmem:[%s2048_s13 + $0x30] sm:$0xff]   ;;  %v2087_v42 = vld [vmem:[%s2048_s13 + $0x48] sm:$0xff]  }
  0x25   : > { %v374_v25 = vor.u32 %v373_v19, %v369_v12  ;;  %v402_v31 = vrot.slane %v400_v23, 1  ;;  %v388_v32 = vshll.u32 %v1792_v24, 16  ;;  %v516_v33 = vrot.slane %v1790_v15, 1  ;;  %v1794_v41 = vld [vmem:[%s2048_s13 + $0x38] ss:$0 sps:$4 sm:$0x11]  }
  0x26   : > { %v398_v30 = vor.u32 %v397_v22, %v393_v16  ;;  %v385_v35 = vrot.slane %v383_v27, 1  ;;  %v512_v36 = vrot.slane %v2068_v20, 1  ;;  %v513_v37 = vrot.slane %v1792_v24, 1  ;;  %v1796_v49 = vld [vmem:[%s2048_s13 + $0x2c] ss:$0 sps:$4 sm:$0x11]  }
  0x27   : > { %v379_v34 = vsel %vm367_vm1, %v374_v25, %v378_v21  ;;  %v390_v40 = vrot.slane %v388_v32, 1  ;;  %v417_v44 = vshrl.u32 %v2076_v29, 16  ;;  %v419_v45 = vshll.u32 %v2076_v29, 16  ;;  %v2099_v54 = vld [vmem:[%s2048_s13 + $0x3c] sm:$0xff]   ;;  %v2120_v15 = vld [vmem:[%s2048_s13 + $0x54] sm:$0xff]  }
  0x28   : > { %488 = vrot.lane.b32.xlu0 %v379_v34, %s1922_s3  ;;  %v403_v39 = vsel %vm367_vm1, %v398_v30, %v402_v31  ;;  %v386_v43 = vor.u32 %v385_v35, %v381_v26  ;;  %v517_v46 = vsel %vm508_vm0, %v515_v28, %v516_v33  ;;  %v514_v47 = vsel %vm508_vm0, %v512_v36, %v513_v37  ;;  %v1798_v0 = vld [vmem:[%s2048_s13 + $0x50] ss:$0 sps:$4 sm:$0x11]   ;;  %v1800_v8 = vld [vmem:[%s2048_s13 + $0x44] ss:$0 sps:$4 sm:$0x11]  }
  0x29   : > { %492 = vrot.lane.b32.xlu1 %v403_v39, %s1922_s3  ;;  %v424_v48 = vshll.u32 %v1794_v41, 16  ;;  %v421_v51 = vrot.slane %v419_v45, 1  ;;  %v405_v52 = vshrl.u32 %v2081_v38, 16  ;;  %v407_v53 = vshll.u32 %v2081_v38, 16  ;;  %v2117_v14 = vld [vmem:[%s2048_s13 + $0x60] sm:$0xff]   ;;  %v1814_v21 = vld [vmem:[%s2404_s1 + $0x18] sm:$0xff]  }
  0x2a   : > { %v391_v50 = vsel %vm367_vm1, %v386_v43, %v390_v40  ;;  %v412_v56 = vshll.u32 %v1796_v49, 16  ;;  %v521_v57 = vrot.slane %v2076_v29, 1  ;;  %v522_v58 = vrot.slane %v1794_v41, 1  ;;  %v2126_v22 = vld [vmem:[%s2048_s13 + $0x68] ss:$0 sps:$4 sm:$0x11]   ;;  %1618 = vmatprep.subr.bf16.mxu0 %v1814_v21 }
  0x2b   : > { %v426_v55 = vrot.slane %v424_v48, 1  ;;  %v422_v59 = vor.u32 %v421_v51, %v417_v44  ;;  %v409_v60 = vrot.slane %v407_v53, 1  ;;  %v518_v61 = vrot.slane %v2081_v38, 1  ;;  %1619 = vmatpush3.bf16.msra.mxu0 %v1814_v21  ;;  %v1815_v30 = vld [vmem:[%s2404_s1 + $0x50] sm:$0xff]   ;;  %v1816_v41 = vld [vmem:[%s2404_s1 + $0x20] sm:$0xff]  }
  0x2c   : > { %490 = vrot.lane.b32.xlu0 %v391_v50, %s1922_s3  ;;  %v519_v62 = vrot.slane %v1796_v49, 1  ;;  %v414_v63 = vrot.slane %v412_v56, 1  ;;  %v441_v1 = vshrl.u32 %v2087_v42, 16  ;;  %v443_v2 = vshll.u32 %v2087_v42, 16  ;;  %v2142_v37 = vld [vmem:[%s2048_s13 + $0x6c] sm:$0xff]   ;;  %1592 = vmatprep.subr.bf16.mxu1 %v1815_v30 }
  0x2d   : > { %543 = vrot.lane.b32.xlu1 %v517_v46, %s1921_s14  ;;  %v427_v3 = vsel %vm367_vm1, %v422_v59, %v426_v55  ;;  %v410_v4 = vor.u32 %v409_v60, %v405_v52  ;;  %v448_v6 = vshll.u32 %v1798_v0, 16  ;;  %v431_v10 = vshll.u32 %v2099_v54, 16  ;;  %v1804_v34 = vld [vmem:[%s2048_s13 + $0x5c] ss:$0 sps:$4 sm:$0x11]   ;;  %1593 = vmatpush3.bf16.msra.mxu1 %v1815_v30  ;;  %v1818_v59 = vld [vmem:[%s2404_s1 + $0x28] sm:$0xff]  }
  0x2e   : > { %v445_v5 = vrot.slane %v443_v2, 1  ;;  %v523_v12 = vsel %vm508_vm0, %v521_v57, %v522_v58  ;;  %v429_v13 = vshrl.u32 %v2099_v54, 16  ;;  %v436_v19 = vshll.u32 %v1800_v8, 16  ;;  %1620 = vmatprep.subr.bf16.mxu0 %v1816_v41  ;;  %v1806_v52 = vld [vmem:[%s2048_s13 + $0x74] ss:$0 sps:$4 sm:$0x11]  }
  0x2f   : > { %v415_v11 = vsel %vm367_vm1, %v410_v4, %v414_v63  ;;  %v450_v17 = vrot.slane %v448_v6, 1  ;;  %v433_v18 = vrot.slane %v431_v10, 1  ;;  %v520_v23 = vsel %vm508_vm0, %v518_v61, %v519_v62  ;;  %1621 = vmatpush3.bf16.msra.mxu0 %v1816_v41  ;;  %v1817_v55 = vld [vmem:[%s2404_s1 + $0x58] sm:$0xff]   ;;  %v1819_v62 = vld [vmem:[%s2404_s1 + $0x60] sm:$0xff]   ;;  %s1923_s13 = smov [#allocation3]  }
  0x30   : > { %541 = vrot.lane.b32.xlu0 %v514_v47, %s1921_s14  ;;  %v446_v16 = vor.u32 %v445_v5, %v441_v1  ;;  %v527_v24 = vrot.slane %v2087_v42, 1  ;;  %v438_v26 = vrot.slane %v436_v19, 1  ;;  %v528_v27 = vrot.slane %v1798_v0, 1  ;;  %1594 = vmatprep.subr.bf16.mxu1 %v1817_v55  ;;  %v1823_v41 = vld [vmem:[%s2404_s1 + $0x80] sm:$0xff]   ;;  %s1829_s16 = sshll.u32 %s1923_s13, 4  ;;  %s1830_s16 = int_to_ptr.vmem [resolvable:$false] %s1829_s16 }
  0x31   : > { %496 = vrot.lane.b32.xlu1 %v427_v3, %s1922_s3  ;;  %v434_v25 = vor.u32 %v433_v18, %v429_v13  ;;  %v467_v28 = vshll.u32 %v2117_v14, 16  ;;  %v465_v32 = vshrl.u32 %v2117_v14, 16  ;;  %v472_v33 = vshll.u32 %v2126_v22, 16  ;;  %1595 = vmatpush3.bf16.msra.mxu1 %v1817_v55 }
  0x32   : > { %v451_v31 = vsel %vm367_vm1, %v446_v16, %v450_v17  ;;  %v455_v35 = vshll.u32 %v2120_v15, 16  ;;  %v524_v39 = vrot.slane %v2099_v54, 1  ;;  %v525_v40 = vrot.slane %v1800_v8, 1  ;;  %1622 = vmatprep.subr.bf16.mxu0 %v1818_v59  ;;  %1668 = vmatprep.subr.bf16.mxu1 %v1819_v62 }
  0x33   : > { %v469_v36 = vrot.slane %v467_v28, 1  ;;  %v439_v43 = vsel %vm367_vm1, %v434_v25, %v438_v26  ;;  %v453_v44 = vshrl.u32 %v2120_v15, 16  ;;  %v460_v46 = vshll.u32 %v1804_v34, 16  ;;  %1623 = vmatpush3.bf16.msra.mxu0 %v1818_v59 }
  0x34   : > { %494 = vrot.lane.b32.xlu0 %v415_v11, %s1922_s3  ;;  %v457_v45 = vrot.slane %v455_v35, 1  ;;  %v529_v47 = vsel %vm508_vm0, %v527_v24, %v528_v27  ;;  %v474_v49 = vrot.slane %v472_v33, 1  ;;  %v533_v50 = vrot.slane %v2117_v14, 1  ;;  %1640 = vmatprep.subr.bf16.mxu0 %v1819_v62 }
  0x35   : > { %547 = vrot.lane.b32.xlu1 %v523_v12, %s1921_s14  ;;  %v470_v48 = vor.u32 %v469_v36, %v465_v32  ;;  %v534_v51 = vrot.slane %v2126_v22, 1  ;;  %v479_v53 = vshll.u32 %v2142_v37, 16  ;;  %v526_v56 = vsel %vm508_vm0, %v524_v39, %v525_v40  ;;  %v1822_v39 = vld [vmem:[%s2404_s1 + $0x78] sm:$0xff]  }
  0x36   : > { %v458_v57 = vor.u32 %v457_v45, %v453_v44  ;;  %v462_v58 = vrot.slane %v460_v46, 1  ;;  %v530_v61 = vrot.slane %v2120_v15, 1  ;;  %v531_v63 = vrot.slane %v1804_v34, 1 }
  0x37   : > { %v475_v60 = vsel %vm367_vm1, %v470_v48, %v474_v49  ;;  %v477_v0 = vshrl.u32 %v2142_v37, 16  ;;  %v481_v2 = vrot.slane %v479_v53, 1  ;;  %v484_v3 = vshll.u32 %v1806_v52, 16  ;;  %v1824_v48 = vld [vmem:[%s2404_s1 + $0x88] sm:$0xff]  }
  0x38   : > { %545 = vrot.lane.b32.xlu0 %v520_v23, %s1921_s14  ;;  %v463_v1 = vsel %vm367_vm1, %v458_v57, %v462_v58  ;;  %v535_v4 = vsel %vm508_vm0, %v533_v50, %v534_v51  ;;  %v536_v5 = vrot.slane %v2142_v37, 1  ;;  %v537_v6 = vrot.slane %v1806_v52, 1 }
  0x39   : > { %500 = vrot.lane.b32.xlu1 %v451_v31, %s1922_s3  ;;  %v532_v8 = vsel %vm508_vm0, %v530_v61, %v531_v63  ;;  %v482_v10 = vor.u32 %v481_v2, %v477_v0  ;;  %v486_v11 = vrot.slane %v484_v3, 1  ;;  %v1821_v31 = vld [vmem:[%s2404_s1 + $0x70] sm:$0xff]  }
  0x3a   : > { %v538_v12 = vsel %vm508_vm0, %v536_v5, %v537_v6 }
  0x3b   : > { %v487_v13 = vsel %vm367_vm1, %v482_v10, %v486_v11 }
  0x3c   : > { %498 = vrot.lane.b32.xlu0 %v439_v43, %s1922_s3 }
  0x3d   : > { %551 = vrot.lane.b32.xlu1 %v529_v47, %s1921_s14 }
  0x40   : > { %549 = vrot.lane.b32.xlu0 %v526_v56, %s1921_s14 }
  0x41   : > { %504 = vrot.lane.b32.xlu1 %v475_v60, %s1922_s3 }
  0x44   : > { %502 = vrot.lane.b32.xlu0 %v463_v1, %s1922_s3 }
  0x45   : > { %555 = vrot.lane.b32.xlu1 %v535_v4, %s1921_s14 }
  0x48   : > { %553 = vrot.lane.b32.xlu0 %v532_v8, %s1921_s14 }
  0x49   : > { %557 = vrot.lane.b32.xlu1 %v538_v12, %s1921_s14 }
  0x4c   : > { %506 = vrot.lane.b32.xlu0 %v487_v13, %s1922_s3  ;;  %s236_s3 = sand.u32 1, %s1895_s18  }
  0x4d   : > { %s1362_s25 = sshll.u32 %s236_s3, 6  ;;  %s2349_s11 = scalar_lea.sflag [#allocation4], %s236_s3 }
  0x4e   : > { %s2302_s28 = scalar_lea.vmem [#allocation3], %s1362_s25  ;;  %s1831_s25 = scalar_lea.vmem %s1830_s16, 2048 }
  0x4f   : > { %s1246_s21 = sshll.u32 %s2302_s28, 4  ;;  %s2342_s21 = int_to_ptr.vmem [resolvable:$true] %s1246_s21 }
  0x50   : > { %p1832_p2 = scmp.lt.s32.totalorder %s2342_s21, %s1830_s16 }
  0x96   : > { %v540_v16 = vpop.permute.xlu1 %539 }
  0x9a   : > { %v489_v17 = vpop.permute.xlu0 %488 }
  0x9b   : > { %v561_v18 = vsel %vm559_vm2, %v2054_v7, %v489_v17  ;;  %v493_v19 = vpop.permute.xlu1 %492  ;;  %v1820_v7 = vld [vmem:[%s2404_s1 + $0x68] sm:$0xff]  }
  0x9c   : > { %v582_v21 = vsel %vm580_vm3, %v561_v18, %v540_v16  ;;  %v565_v24 = vsel %vm559_vm2, %v2058_v9, %v493_v19 }
  0x9d   : > { %1624 = vmatprep.mubr.msk.bf16.mxu0 %vm662_vm4, %v582_v21 }
  0x9e   : > { %v491_v22 = vpop.permute.xlu0 %490 }
  0x9f   : > { %v544_v23 = vpop.permute.xlu1 %543  ;;  %v563_v25 = vsel %vm559_vm2, %v2068_v20, %v491_v22 }
  0xa0   : > { %v2198_v30 = vsel %vm580_vm3, %v565_v24, %v544_v23 }
  0xa2   : > { %v542_v26 = vpop.permute.xlu0 %541 }
  0xa3   : > { %v497_v27 = vpop.permute.xlu1 %496  ;;  %v584_v28 = vsel %vm580_vm3, %v563_v25, %v542_v26 }
  0xa4   : > { %1596 = vmatprep.mubr.msk.bf16.mxu1 %vm662_vm4, %v584_v28  ;;  %1625 = vmatmul.mubr.msk.bf16.vlgmr.msra.gmra.mrb[0].mxu0 %vm662_vm4, %v584_v28  ;;  %v569_v32 = vsel %vm559_vm2, %v2076_v29, %v497_v27 }
  0xa5   : > { %1597 = vmatmul.mubr.msk.bf16.vlgmr.msra.gmra.mrb[0].mxu1 %vm662_vm4, %v2198_v30  ;;  %1628 = vmatprep.mubr.msk.bf16.mxu0 %vm662_vm4, %v2198_v30 }
  0xa6   : > { %1641 = vmatpush3.bf16.msra.mxu0 %v1819_v62  ;;  %1674 = vmatpush3.bf16.msra.mxu1 %v1819_v62  ;;  %v495_v9 = vpop.permute.xlu0 %494 }
  0xa7   : > { %v548_v20 = vpop.permute.xlu1 %547  ;;  %1642 = vmatprep.subr.bf16.mxu0 %v1820_v7  ;;  %1669 = vmatprep.subr.bf16.mxu1 %v1820_v7  ;;  %v567_v33 = vsel %vm559_vm2, %v2081_v38, %v495_v9  ;;  %v2278_v9 = vld [vmem:[%s2405_s2] ss:$0 sm:$0xff] }
  0xa8   : > { %v590_v40 = vsel %vm580_vm3, %v569_v32, %v548_v20 }
  0xaa   : > { %v546_v34 = vpop.permute.xlu0 %545  ;;  %1643 = vmatpush3.bf16.msra.mxu0 %v1820_v7  ;;  %1675 = vmatpush3.bf16.msra.mxu1 %v1820_v7 }
  0xab   : > { %v588_v35 = vsel %vm580_vm3, %v567_v33, %v546_v34  ;;  %v501_v36 = vpop.permute.xlu1 %500  ;;  %1644 = vmatprep.subr.bf16.mxu0 %v1821_v31  ;;  %1670 = vmatprep.subr.bf16.mxu1 %v1821_v31  ;;  %v2280_v33 = vstv %s1098_s15  ;;  %s1825_s15 = scalar_lea.vmem %s2342_s21, 1024 }
  0xac   : > { %1600 = vmatprep.mubr.msk.bf16.mxu1 %vm662_vm4, %v588_v35  ;;  %1629 = vmatmul.mubr.msk.bf16.gmra.mrb[4].mxu0 %vm662_vm4, %v588_v35  ;;  %v573_v43 = vsel %vm559_vm2, %v2087_v42, %v501_v36  ;;  %p1826_p13 = scmp.ne.s32.totalorder %s2342_s21, %s1825_s15  ;;  %p1833_p4 = scmp.lt.s32.totalorder %s1831_s25, %s1825_s15 }
  0xad   : > { %1601 = vmatmul.mubr.msk.bf16.gmra.mrb[4].mxu1 %vm662_vm4, %v590_v40  ;;  %1632 = vmatprep.mubr.msk.bf16.mxu0 %vm662_vm4, %v590_v40 }
  0xae   : > { %v499_v29 = vpop.permute.xlu0 %498  ;;  %1645 = vmatpush3.bf16.msra.mxu0 %v1821_v31  ;;  %1676 = vmatpush3.bf16.msra.mxu1 %v1821_v31  ;;  %p1827_p0 = pnand %p1826_p13, %p2004_p3  ;;  %p1834_p5 = por %p1833_p4, %p1832_p2 }
  0xaf   : > { %v552_v38 = vpop.permute.xlu1 %551  ;;  %1646 = vmatprep.subr.bf16.mxu0 %v1822_v39  ;;  %1671 = vmatprep.subr.bf16.mxu1 %v1822_v39  ;;  %v571_v44 = vsel %vm559_vm2, %v2099_v54, %v499_v29 }
  0xb0   : > { %v594_v49 = vsel %vm580_vm3, %v573_v43, %v552_v38  ;;  %p1828_p1 = pneg %p1827_p0 }
  0xb2   : > { %v550_v45 = vpop.permute.xlu0 %549  ;;  %1647 = vmatpush3.bf16.msra.mxu0 %v1822_v39  ;;  %1677 = vmatpush3.bf16.msra.mxu1 %v1822_v39  ;;  %p1835_p6 = pnand %p1834_p5, %p1828_p1 }
  0xb3   : > { %v592_v46 = vsel %vm580_vm3, %v571_v44, %v550_v45  ;;  %v505_v47 = vpop.permute.xlu1 %504  ;;  %1648 = vmatprep.subr.bf16.mxu0 %v1823_v41  ;;  %1672 = vmatprep.subr.bf16.mxu1 %v1823_v41 }
  0xb4   : > { %1604 = vmatprep.mubr.msk.bf16.mxu1 %vm662_vm4, %v592_v46  ;;  %1633 = vmatmul.mubr.msk.bf16.gmra.mrb[8].mxu0 %vm662_vm4, %v592_v46  ;;  %v577_v54 = vsel %vm559_vm2, %v2117_v14, %v505_v47 }
  0xb5   : > { %1605 = vmatmul.mubr.msk.bf16.gmra.mrb[8].mxu1 %vm662_vm4, %v594_v49  ;;  %1636 = vmatprep.mubr.msk.bf16.mxu0 %vm662_vm4, %v594_v49 }
  0xb6   : > { %v503_v42 = vpop.permute.xlu0 %502  ;;  %1649 = vmatpush3.bf16.msra.mxu0 %v1823_v41  ;;  %1678 = vmatpush3.bf16.msra.mxu1 %v1823_v41 }
  0xb7   : > { %1650 = vmatprep.subr.bf16.mxu0 %v1824_v48  ;;  %1673 = vmatprep.subr.bf16.mxu1 %v1824_v48  ;;  %v556_v50 = vpop.permute.xlu1 %555  ;;  %v575_v51 = vsel %vm559_vm2, %v2120_v15, %v503_v42 }
  0xb8   : > { %v598_v55 = vsel %vm580_vm3, %v577_v54, %v556_v50 }
  0xba   : > { %v554_v52 = vpop.permute.xlu0 %553  ;;  %1651 = vmatpush3.bf16.msra.mxu0 %v1824_v48  ;;  %1679 = vmatpush3.bf16.msra.mxu1 %v1824_v48 }
  0xbb   : > { %v596_v53 = vsel %vm580_vm3, %v575_v51, %v554_v52  ;;  %v558_v56 = vpop.permute.xlu1 %557 }
  0xbc   : > { %1608 = vmatprep.mubr.msk.bf16.mxu1 %vm662_vm4, %v596_v53  ;;  %1637 = vmatmul.mubr.msk.bf16.gmra.mrb[12].mxu0 %vm662_vm4, %v596_v53 }
  0xbd   : > { %1609 = vmatmul.mubr.msk.bf16.gmra.mrb[12].mxu1 %vm662_vm4, %v598_v55  ;;  %1652 = vmatprep.mubr.msk.bf16.mxu0 %vm662_vm4, %v2198_v30 }
  0xbe   : > { %1660 = vmatprep.mubr.msk.bf16.mxu1 %vm662_vm4, %v594_v49  ;;  %v507_v14 = vpop.permute.xlu0 %506 }
  0xbf   : > { %v579_v15 = vsel %vm559_vm2, %v2142_v37, %v507_v14 }
  0xc0   : > { %v600_v57 = vsel %vm580_vm3, %v579_v15, %v558_v56 }
  0xc4   : > { %1653 = vmatmul.mubr.msk.bf16.vlgmr.msra.gmra.mrb[0].mxu0 %vm662_vm4, %v588_v35 }
  0xc5   : > { %1656 = vmatprep.mubr.msk.bf16.mxu0 %vm662_vm4, %v590_v40  ;;  %1661 = vmatmul.mubr.msk.bf16.vlgmr.msra.gmra.mrb[16].mxu1 %vm662_vm4, %v596_v53 }
  0xc6   : > { %1664 = vmatprep.mubr.msk.bf16.mxu1 %vm662_vm4, %v598_v55 }
  0xcc   : > { %1657 = vmatmul.mubr.msk.bf16.gmra.mrb[4].mxu0 %vm662_vm4, %v592_v46 }
  0xcd   : > { %1665 = vmatmul.mubr.msk.bf16.gmra.mrb[20].mxu1 %vm662_vm4, %v600_v57 }
 0x178   : > { %v1598_v58 = vpop.f32.mrb[0].mxu1 }
 0x179   : > { %v713_v59 = vpop.f32.mrb[1].mxu1 }
 0x17a   : > { %v1599_v60 = vpop.f32.mrb[2].mxu1 }
 0x17b   : > { %v716_v61 = vpop.f32.mrb[3].mxu1 }
 0x180   : > { %v2259_v62 = vpop.f32.mrb[4].mxu1 }
 0x181   : > { %v2261_v63 = vpop.f32.mrb[5].mxu1 }
 0x182   : > { %v2263_v0 = vpop.f32.mrb[6].mxu1 }
 0x183   : > { %v2265_v1 = vpop.f32.mrb[7].mxu1 }
 0x187   : > { %v1634_v37 = vpop.f32.mrb[8].mxu0 }
 0x188   : > { %v1606_v2 = vpop.f32.mrb[8].mxu1  ;;  %v880_v3 = vpop.f32.mrb[9].mxu0 }
 0x189   : > { %v889_v4 = vadd.f32 %v1634_v37, %v1606_v2  ;;  %v745_v5 = vpop.f32.mrb[9].mxu1  ;;  %v1635_v6 = vpop.f32.mrb[10].mxu0 }
 0x18a   : > { %v881_v8 = vadd.f32 %v880_v3, %v745_v5  ;;  %v1607_v10 = vpop.f32.mrb[10].mxu1  ;;  %v883_v11 = vpop.f32.mrb[11].mxu0 }
 0x18b   : > { %v892_v12 = vadd.f32 %v1635_v6, %v1607_v10  ;;  %v748_v13 = vpop.f32.mrb[11].mxu1 }
 0x18c   : > { %v884_v16 = vadd.f32 %v883_v11, %v748_v13 }
 0x18f   : > { %v1638_v17 = vpop.f32.mrb[12].mxu0 }
 0x190   : > { %v1610_v18 = vpop.f32.mrb[12].mxu1  ;;  %v896_v19 = vpop.f32.mrb[13].mxu0 }
 0x191   : > { %v2267_v21 = vadd.f32 %v1638_v17, %v1610_v18  ;;  %v761_v22 = vpop.f32.mrb[13].mxu1  ;;  %v1639_v23 = vpop.f32.mrb[14].mxu0 }
 0x192   : > { %v2269_v24 = vadd.f32 %v896_v19, %v761_v22  ;;  %v1611_v25 = vpop.f32.mrb[14].mxu1  ;;  %v899_v26 = vpop.f32.mrb[15].mxu0 }
 0x193   : > { %v2271_v27 = vadd.f32 %v1639_v23, %v1611_v25  ;;  %v764_v28 = vpop.f32.mrb[15].mxu1 }
 0x194   : > { %v2273_v7 = vadd.f32 %v899_v26, %v764_v28 }
 0x197   : > { %v1654_v30 = vpop.f32.mrb[0].mxu0 }
 0x198   : > { %v1680_v20 = vadd.f32 %v1654_v30, %v1598_v58  ;;  %v996_v31 = vpop.f32.mrb[1].mxu0  ;;  %v1662_v32 = vpop.f32.mrb[16].mxu1 }
 0x199   : > { %v1681_v34 = vadd.f32 %v996_v31, %v713_v59  ;;  %v1069_v35 = vadd.f32 %v1662_v32, %v889_v4  ;;  %v1655_v36 = vpop.f32.mrb[2].mxu0  ;;  %v1028_v39 = vpop.f32.mrb[17].mxu1 }
 0x19a   : > { %v1084_v40 = vadd.f32 %v1680_v20, %v2278_v9  ;;  %v1682_v29 = vadd.f32 %v1655_v36, %v1599_v60  ;;  %v1067_v38 = vadd.f32 %v1028_v39, %v881_v8  ;;  %v999_v41 = vpop.f32.mrb[3].mxu0  ;;  %v1663_v43 = vpop.f32.mrb[18].mxu1 }
 0x19b   : > { %v1082_v44 = vadd.f32 %v1681_v34, %v2278_v9  ;;  %v1092_v45 = vadd.f32 %v2278_v9, %v1069_v35  ;;  %v1683_v46 = vadd.f32 %v999_v41, %v716_v61  ;;  %v1070_v47 = vadd.f32 %v1663_v43, %v892_v12  ;;  %v1031_v48 = vpop.f32.mrb[19].mxu1 }
 0x19c   : > { %vm1101_vm5 = vcmp.ge.f32.partialorder %v1084_v40, 0.0  ;;  %v1118_v49 = vmul.f32 %v2280_v33, %v1084_v40  ;;  %v1085_v42 = vadd.f32 %v1682_v29, %v2278_v9  ;;  %v1090_v54 = vadd.f32 %v2278_v9, %v1067_v38 }
 0x19d   : > { %vm1099_vm6 = vcmp.ge.f32.partialorder %v1082_v44, 0.0  ;;  %v1116_v50 = vmul.f32 %v2280_v33, %v1082_v44  ;;  %vm1109_vm7 = vcmp.ge.f32.partialorder %v1092_v45, 0.0  ;;  %v1126_v51 = vmul.f32 %v2280_v33, %v1092_v45 }
 0x19e   : > { %v1134_v52 = vsel %vm1101_vm5, %v1084_v40, %v1118_v49  ;;  %vm1102_vm8 = vcmp.ge.f32.partialorder %v1085_v42, 0.0  ;;  %v1119_v53 = vmul.f32 %v2280_v33, %v1085_v42  ;;  %vm1107_vm9 = vcmp.ge.f32.partialorder %v1090_v54, 0.0 }
 0x19f   : > { %v1132_v55 = vsel %vm1099_vm6, %v1082_v44, %v1116_v50  ;;  %v1142_v14 = vsel %vm1109_vm7, %v1092_v45, %v1126_v51  ;;  %v1083_v15 = vadd.f32 %v1683_v46, %v2278_v9  ;;  %v1658_v56 = vpop.f32.mrb[4].mxu0  ;;  %v1093_v58 = vadd.f32 %v2278_v9, %v1070_v47 }
 0x1a0   : > { %v1135_v57 = vsel %vm1102_vm8, %v1085_v42, %v1119_v53  ;;  %v1068_v59 = vadd.f32 %v1031_v48, %v884_v16  ;;  %v1684_v60 = vadd.f32 %v1658_v56, %v2259_v62  ;;  %v1012_v61 = vpop.f32.mrb[5].mxu0  ;;  %v1666_v37 = vpop.f32.mrb[20].mxu1  ;;  %v1124_v3 = vmul.f32 %v2280_v33, %v1090_v54 }
 0x1a1   : > { %v1503_v2 = vpack.c.bf16 %v1135_v57, %v1134_v52  ;;  %vm1100_vm10 = vcmp.ge.f32.partialorder %v1083_v15, 0.0  ;;  %v1117_v4 = vmul.f32 %v2280_v33, %v1083_v15  ;;  %v1659_v5 = vpop.f32.mrb[6].mxu0  ;;  %v1044_v6 = vpop.f32.mrb[21].mxu1  ;;  %vm1110_vm11 = vcmp.ge.f32.partialorder %v1093_v58, 0.0 }
 0x1a2   : > { %v1127_v8 = vmul.f32 %v2280_v33, %v1093_v58  ;;  %v1091_v10 = vadd.f32 %v2278_v9, %v1068_v59  ;;  %v1088_v11 = vadd.f32 %v1684_v60, %v2278_v9  ;;  %v1015_v12 = vpop.f32.mrb[7].mxu0  ;;  %v1667_v13 = vpop.f32.mrb[22].mxu1  ;;  %v1685_v16 = vadd.f32 %v1012_v61, %v2261_v63 }
 0x1a3   : > { %1535 = vst [vmem:[%s2302_s28 + $0x8] sm:$0xff] %v1503_v2   ;;  %v1133_v62 = vsel %vm1100_vm10, %v1083_v15, %v1117_v4  ;;  %v1073_v17 = vadd.f32 %v1666_v37, %v2267_v21  ;;  %v1686_v18 = vadd.f32 %v1659_v5, %v2263_v0  ;;  %v1047_v19 = vpop.f32.mrb[23].mxu1  ;;  %v1140_v26 = vsel %vm1107_vm9, %v1090_v54, %v1124_v3 }
 0x1a4   : > { %v1498_v22 = vpack.c.bf16 %v1133_v62, %v1132_v55  ;;  %v1143_v23 = vsel %vm1110_vm11, %v1093_v58, %v1127_v8  ;;  %vm1108_vm12 = vcmp.ge.f32.partialorder %v1091_v10, 0.0  ;;  %v1125_v25 = vmul.f32 %v2280_v33, %v1091_v10 }
 0x1a5   : > { %v1523_v28 = vpack.c.bf16 %v1143_v23, %v1142_v14  ;;  %v1122_v30 = vmul.f32 %v2280_v33, %v1088_v11  ;;  %v1086_v21 = vadd.f32 %v1685_v16, %v2278_v9  ;;  %v1089_v0 = vadd.f32 %v1686_v18, %v2278_v9 }
 0x1a6   : > { %1499 = vst [vmem:[%s2302_s28] sm:$0xff] %v1498_v22   ;;  %v1141_v63 = vsel %vm1108_vm12, %v1091_v10, %v1125_v25  ;;  %v1071_v20 = vadd.f32 %v1044_v6, %v2269_v24  ;;  %vm1105_vm13 = vcmp.ge.f32.partialorder %v1088_v11, 0.0  ;;  %v1096_v32 = vadd.f32 %v2278_v9, %v1073_v17 }
 0x1a7   : > { %1539 = vst [vmem:[%s2302_s28 + $0x28] sm:$0xff] %v1523_v28   ;;  %v1518_v31 = vpack.c.bf16 %v1141_v63, %v1140_v26  ;;  %vm1106_vm14 = vcmp.ge.f32.partialorder %v1089_v0, 0.0  ;;  %v1123_v34 = vmul.f32 %v2280_v33, %v1089_v0  ;;  %v1687_v36 = vadd.f32 %v1015_v12, %v2265_v1 }
 0x1a8   : > { %v1094_v35 = vadd.f32 %v2278_v9, %v1071_v20  ;;  %v1074_v39 = vadd.f32 %v1667_v13, %v2271_v27  ;;  %v1138_v40 = vsel %vm1105_vm13, %v1088_v11, %v1122_v30  ;;  %vm1103_vm15 = vcmp.ge.f32.partialorder %v1086_v21, 0.0 }
 0x1a9   : > { %1538 = vst [vmem:[%s2302_s28 + $0x20] sm:$0xff] %v1518_v31   ;;  %v1139_v24 = vsel %vm1106_vm14, %v1089_v0, %v1123_v34  ;;  %v1072_v29 = vadd.f32 %v1047_v19, %v2273_v7  ;;  %v1120_v38 = vmul.f32 %v2280_v33, %v1086_v21  ;;  %v1130_v41 = vmul.f32 %v2280_v33, %v1096_v32 }
 0x1aa   : > { %v1513_v43 = vpack.c.bf16 %v1139_v24, %v1138_v40  ;;  %v1087_v44 = vadd.f32 %v1687_v36, %v2278_v9  ;;  %vm1113_vm0 = vcmp.ge.f32.partialorder %v1096_v32, 0.0  ;;  %v1128_v45 = vmul.f32 %v2280_v33, %v1094_v35 }
 0x1ab   : > { %v1097_v1 = vadd.f32 %v2278_v9, %v1074_v39  ;;  %v1095_v27 = vadd.f32 %v2278_v9, %v1072_v29  ;;  %vm1111_vm1 = vcmp.ge.f32.partialorder %v1094_v35, 0.0  ;;  %v1136_v48 = vsel %vm1103_vm15, %v1086_v21, %v1120_v38 }
 0x1ac   : > { %1537 = vst [vmem:[%s2302_s28 + $0x18] sm:$0xff] %v1513_v43   ;;  %vm1104_vm2 = vcmp.ge.f32.partialorder %v1087_v44, 0.0  ;;  %v1121_v7 = vmul.f32 %v2280_v33, %v1087_v44  ;;  %v1146_v9 = vsel %vm1113_vm0, %v1096_v32, %v1130_v41  ;;  %v1144_v42 = vsel %vm1111_vm1, %v1094_v35, %v1128_v45 }
 0x1ad   : > { %vm1114_vm3 = vcmp.ge.f32.partialorder %v1097_v1, 0.0  ;;  %v1131_v46 = vmul.f32 %v2280_v33, %v1097_v1  ;;  %vm1112_vm4 = vcmp.ge.f32.partialorder %v1095_v27, 0.0  ;;  %v1129_v47 = vmul.f32 %v2280_v33, %v1095_v27 }
 0x1ae   : > { %v1137_v49 = vsel %vm1104_vm2, %v1087_v44, %v1121_v7 }
 0x1af   : > { %v1508_v54 = vpack.c.bf16 %v1137_v49, %v1136_v48  ;;  %v1147_v50 = vsel %vm1114_vm3, %v1097_v1, %v1131_v46  ;;  %v1145_v51 = vsel %vm1112_vm4, %v1095_v27, %v1129_v47 }
 0x1b0   : > { %v1533_v52 = vpack.c.bf16 %v1147_v50, %v1146_v9  ;;  %v1528_v53 = vpack.c.bf16 %v1145_v51, %v1144_v42 }
 0x1b1   : > { %1536 = vst [vmem:[%s2302_s28 + $0x10] sm:$0xff] %v1508_v54  }
 0x1b2   : > { %1541 = vst [vmem:[%s2302_s28 + $0x38] sm:$0xff] %v1533_v52   ;;  %1540 = vst [vmem:[%s2302_s28 + $0x30] sm:$0xff] %v1528_v53  }
 0x1b3   : > { %1838 = shalt.err (!%p1835_p6)
}
 0x1b4   : > { %s1839_s3 = scalar_lea.hbm %s2340_s12, 1024  ;;  %s1843_s6 = scalar_lea.hbm %s2407_s4, 4096 }
 0x1b5   : > { %p1840_p7 = scmp.ne.s32.totalorder %s2340_s12, %s1839_s3  ;;  %p1844_p11 = scmp.lt.u32.totalorder %s2340_s12, %s2407_s4 }
 0x1b6   : > { %p1845_p12 = scmp.lt.u32.totalorder %s1843_s6, %s1839_s3  ;;  %p1847_p0 = scmp.lt.u32.totalorder %s1839_s3, %s2340_s12 }
 0x1b7   : > { %p1841_p9 = pnand %p1840_p7, %p2004_p3 }
 0x1b8   : > { %p1846_p13 = por %p1845_p12, %p1844_p11 }
 0x1b9   : > { %p1842_p10 = pneg %p1841_p9 }
 0x1ba   : > { %p1848_p1 = por %p1847_p0, %p1846_p13 }
 0x1bc   : > { %p1849_p2 = pnand %p1848_p1, %p1842_p10 }
 0x1be   : > { %1852 = shalt.err (!%p1849_p2)
}
 0x1bf   : > { %s1924_s9 = smov 4  }
 0x1c0   : > { %1713 = dma.vmem_to_hbm [thread:$0]  (%p2004_p3), %s2342_s21, 1024, %s2340_s12, %s2349_s11, %s1921_s14, %s1921_s14, %s1924_s9  }
 0x1c1 PF: > { %p1719_p4 = scmp.ge.s32.totalorder %s1919_s24, 2  ;;  %s1261_s10 = sand.u32 1, %s1891_s17  }
 0x1c2   : > { %s1262_s15 = scalar_lea.sflag [#allocation4], %s1261_s10 }
 0x1c3   : > { %p1716_p5 = pnand %p1719_p4, %p2013_p8 }
 0x1c5   : > { %1886 = dma.done.wait (!%p1716_p5), %s1262_s15, 1024  }
 0x1c6   : > { %1888 = vsyncadd (!%p1716_p5), %s1262_s15, 4294966272  ;;  %s18_s24 = sadd.s32 1, %s1919_s24   ;;  %s2410_s17 = smov %s1895_s18 }
 0x1c7   : > { %p15_p6 = scmp.ge.s32.totalorder %s18_s24, 6   ;;  %s2411_s18 = smov %s1899_s19 }
 0x1c8   : > { %s2412_s19 = smov %s2022_s8  ;;  %s2413_s20 = smov %s1911_s22 }
 0x1c9   : > { %s2414_s21 = smov %s1915_s23  ;;  %s2415_s22 = smov %s2418_s26 }
 0x1ca   : > { %s2416_s23 = smov %s2422_s27  ;;  %17 = sbr.rel (!%p15_p6) target bundleno = 7 (0x7), region = 80 }
 0x1d1   :  { %1267 = vsyncpa [#allocation4], 1 }
 0x1d2   :  { %1269 = vsyncpa [#allocation4 + $0x1], 1 }

</bundles_post_ra>
